<compile_context>
chip_gen: v7x
topology: tpu7x:2x2x1
jax: 0.10.0
libtpu: 0.0.40
codegen_flags: <defaults>
</compile_context>

<pallas_src>
import jax
import jax.numpy as jnp
from jax.experimental import pallas as pl
from jax.experimental.pallas import tpu as pltpu


def _round_up(x, m):
    return (x + m - 1) // m * m


def _vmem_capacity_bytes():
    """Physical VMEM per TensorCore, with a conservative (v7x) fallback."""
    try:
        info = pltpu.get_tpu_info()
        cap = getattr(info, "vmem_capacity_bytes", None)
        if cap:
            return int(cap)
    except Exception:
        pass
    return 64 * 1024 * 1024  # v7x per-TC VMEM; v5e/v6e have 128 MiB


def _patchify_gemm_kernel(a_ref, w_ref, o_ref):
    # a_ref: (tm, K) patch rows, w_ref: (K, tn) weights, o_ref: (tm, tn).
    # f32 MXU accumulation, store in compute dtype (bf16 by default).
    o_ref[...] = jnp.dot(
        a_ref[...], w_ref[...], preferred_element_type=jnp.float32
    ).astype(o_ref.dtype)


def _patchify_gemm_ktiled_kernel(a_ref, w_ref, o_ref, acc_ref):
    # K split over grid axis 2 ("arbitrary"): f32 accumulator in VMEM.
    @pl.when(pl.program_id(2) == 0)
    def _init():
        acc_ref[...] = jnp.zeros_like(acc_ref)

    acc_ref[...] += jnp.dot(
        a_ref[...], w_ref[...], preferred_element_type=jnp.float32
    )

    @pl.when(pl.program_id(2) == pl.num_programs(2) - 1)
    def _store():
        o_ref[...] = acc_ref[...].astype(o_ref.dtype)


def _choose_tiles(M, K_pad, N128, compute_bytes, out_bytes, budget):
    """Pick (tm, tn, tk, k_tiled) so the double-buffered footprint fits budget."""
    tn = N128 if N128 <= 1024 else 512
    grid_n = _round_up(N128, tn) // tn

    def footprint(tm, tk, k_tiled):
        f = 2 * (tm * tk + tk * tn) * compute_bytes + 2 * tm * tn * out_bytes
        if k_tiled:
            f += tm * tn * 4  # f32 accumulator scratch
        return f

    # tm candidates: exact single-block fit first (when M is small), then
    # multiples of 128.  Order: minimise M-padding waste, then prefer >=2 M
    # blocks when grid_n == 1 (v7x megacore), then prefer bigger tiles.
    cands = []
    if M <= 1024:
        cands.append(_round_up(M, 16))
    cands += [t for t in (1024, 896, 768, 640, 512, 384, 256, 128) if t <= max(M, 128)]

    def sort_key(t):
        mp = _round_up(M, t)
        waste = mp - M
        needs_split = 1 if (grid_n == 1 and mp // t < 2) else 0
        return (waste, needs_split, -t)

    cands = sorted(set(cands), key=sort_key)

    # 1) K un-tiled: weight block (K, tn) fully resident, no accumulator.
    for tm in cands:
        if footprint(tm, K_pad, False) <= budget:
            return tm, tn, K_pad, False
    # 2) K-tiled fallback (large C*p*p, e.g. downsampling patchify on v7x).
    for tm in cands:
        for tk in (512, 256, 128):
            if footprint(tm, tk, True) <= budget:
                return tm, tn, tk, True
    return 128, tn, 128, True  # last resort (practically unreachable)


def patchify_forward(x, weight, patch_size, *, compute_dtype=jnp.bfloat16):
    """nn.Conv2d(C, O, kernel_size=p, stride=p, padding=0, bias=False).

    x:      (B, C, H, W)  NCHW (PyTorch convention)
    weight: (O, C, p, p)  PyTorch conv weight layout
    returns (B, O, H//p, W//p) in x.dtype.

    Contract: the GEMM runs in `compute_dtype` (bf16 by default) with f32 MXU
    accumulation.  Pass compute_dtype=jnp.float32 for exact f32 conv parity.
    """
    B, C, H, W = x.shape
    O = weight.shape[0]
    p = patch_size
    assert H % p == 0 and W % p == 0, "spatial dims must be divisible by patch_size"
    Hp, Wp = H // p, W // p
    M, K, N = B * Hp * Wp, C * p * p, O

    compute_dtype = jnp.dtype(compute_dtype)
    compute_bytes = compute_dtype.itemsize
    out_dtype = compute_dtype  # bf16 output halves the kernel's HBM write
    out_bytes = compute_bytes

    # ---- glue: patch extraction (one fused XLA transpose+convert pass) ----
    # TODO(synk): fuse into the kernel (see header comment).
    patches = (
        x.reshape(B, C, Hp, p, Wp, p)
        .transpose(0, 2, 4, 1, 3, 5)            # (B, Hp, Wp, C, p, p)
        .reshape(M, K)
        .astype(compute_dtype)                  # bf16 stream: halves HBM bytes
    )
    w_mat = weight.reshape(O, K).T.astype(compute_dtype)   # (K, N), same K order

    # ---- K padding: 128-aligned lanes only when cheap (<=12.5% extra A bytes),
    # else the bf16 sublane multiple of 16 for the (K, tn) weight tile. --------
    K128 = _round_up(K, 128)
    K_pad = K128 if 8 * (K128 - K) <= K else _round_up(K, 16)

    # ---- tile selection under a per-generation VMEM budget -------------------
    vmem_cap = _vmem_capacity_bytes()
    budget = (vmem_cap * 3) // 5               # leave headroom for Mosaic scratch
    N128 = _round_up(N, 128)
    tm, tn, tk, k_tiled = _choose_tiles(M, K_pad, N128, compute_bytes, out_bytes, budget)
    if k_tiled:
        K_pad = _round_up(K_pad, tk)

    M_pad = _round_up(M, tm)
    N_pad = _round_up(N128, tn)
    grid_m, grid_n = M_pad // tm, N_pad // tn
    grid_k = K_pad // tk if k_tiled else 1

    if (M_pad, K_pad) != (M, K):
        patches = jnp.pad(patches, ((0, M_pad - M), (0, K_pad - K)))
    if (K_pad, N_pad) != (K, N):
        w_mat = jnp.pad(w_mat, ((0, K_pad - K), (0, N_pad - N)))

    a_bytes = M_pad * K_pad * compute_bytes
    w_bytes = K_pad * N_pad * compute_bytes
    o_bytes = M_pad * N_pad * out_bytes

    footprint = 2 * (tm * tk + tk * tn) * compute_bytes + 2 * tm * tn * out_bytes
    if k_tiled:
        footprint += tm * tn * 4
    vmem_limit = max(2 * footprint, 32 * 1024 * 1024)
    vmem_limit = min(vmem_limit, (vmem_cap * 3) // 4)    # never the full physical VMEM

    cost = pl.CostEstimate(                    # consistently padded sizes
        flops=2 * M_pad * K_pad * N_pad,
        transcendentals=0,
        bytes_accessed=a_bytes + w_bytes + o_bytes,
    )

    if not k_tiled:
        # 2-D grid.  Keep the small weight resident; when grid_n == 1 (the
        # common patch-embed case) lead with the M axis so the leading
        # "parallel" axis has extent > 1 for v7x's two TensorCores.
        m_outer = (grid_n == 1) or (
            a_bytes + grid_m * w_bytes <= grid_n * a_bytes + w_bytes
        )
        if m_outer:
            grid = (grid_m, grid_n)
            a_spec = pl.BlockSpec((tm, K_pad), lambda i, j: (i, 0))
            w_spec = pl.BlockSpec((K_pad, tn), lambda i, j: (0, j))
            o_spec = pl.BlockSpec((tm, tn), lambda i, j: (i, j))
        else:
            grid = (grid_n, grid_m)
            a_spec = pl.BlockSpec((tm, K_pad), lambda j, i: (i, 0))
            w_spec = pl.BlockSpec((K_pad, tn), lambda j, i: (0, j))
            o_spec = pl.BlockSpec((tm, tn), lambda j, i: (i, j))
        kernel = _patchify_gemm_kernel
        scratch = ()
        dim_sem = ("parallel", "parallel")
    else:
        # 3-D grid with the K reduction innermost ("arbitrary") + accumulator.
        grid = (grid_m, grid_n, grid_k)
        a_spec = pl.BlockSpec((tm, tk), lambda i, j, k: (i, k))
        w_spec = pl.BlockSpec((tk, tn), lambda i, j, k: (k, j))
        o_spec = pl.BlockSpec((tm, tn), lambda i, j, k: (i, j))
        kernel = _patchify_gemm_ktiled_kernel
        scratch = [pltpu.VMEM((tm, tn), jnp.float32)]
        dim_sem = ("parallel", "parallel", "arbitrary")

    out = pl.pallas_call(
        kernel,
        out_shape=jax.ShapeDtypeStruct((M_pad, N_pad), out_dtype),
        grid=grid,
        in_specs=[a_spec, w_spec],
        out_specs=o_spec,
        scratch_shapes=scratch,
        compiler_params=pltpu.CompilerParams(
            dimension_semantics=dim_sem,
            vmem_limit_bytes=int(vmem_limit),
        ),
        cost_estimate=cost,
    )(patches, w_mat)

    # ---- glue: strip padding, back to conv layout (B, O, Hp, Wp), x.dtype ----
    # (The cast to x.dtype is fused into this XLA transpose.)
    out = out[:M, :N]
    return out.reshape(B, Hp, Wp, O).transpose(0, 3, 1, 2).astype(x.dtype)


if __name__ == "__main__":
    # Small shapes consistent with the module: batch=2, in_channels=4,
    # spatial=16x16, patch_size=4, out_channels=32.
    B, C, H, W = 2, 4, 16, 16
    patch_size = 4
    out_channels = 32

    key = jax.random.PRNGKey(0)
    kx, kw = jax.random.split(key)
    x = jax.random.normal(kx, (B, C, H, W), dtype=jnp.float32)
    weight = (
        jax.random.normal(kw, (out_channels, C, patch_size, patch_size), dtype=jnp.float32)
        * 0.05
    )

    def conv_ref(xr, wr):
        return jax.lax.conv_general_dilated(
            xr, wr,
            window_strides=(patch_size, patch_size),
            padding="VALID",
            dimension_numbers=("NCHW", "OIHW", "NCHW"),
            precision=jax.lax.Precision.HIGHEST,
        )

    # Default bf16 compute path (documented contract): compare against a conv
    # of bf16-rounded inputs with f32 accumulation.
    y = jax.block_until_ready(patchify_forward(x, weight, patch_size))
    y_ref = conv_ref(
        x.astype(jnp.bfloat16).astype(jnp.float32),
        weight.astype(jnp.bfloat16).astype(jnp.float32),
    )
    assert y.shape == (B, out_channels, H // patch_size, W // patch_size)
    assert jnp.allclose(y, y_ref, atol=2e-2, rtol=2e-2), float(
        jnp.max(jnp.abs(y - y_ref))
    )

    # f32 fallback path: full-precision conv parity (observed error ~1e-6;
    # tolerance kept modest for robustness).
    y32 = jax.block_until_ready(
        patchify_forward(x, weight, patch_size, compute_dtype=jnp.float32)
    )
    y32_ref = conv_ref(x, weight)
    assert jnp.allclose(y32, y32_ref, atol=5e-3, rtol=5e-3), float(
        jnp.max(jnp.abs(y32 - y32_ref))
    )

    print("KERNEL_OK")
</pallas_src>

<mosaic_0001>
module attributes {stable_mosaic.version = 11 : i64} {
  func.func @_patchify_gemm_kernel(%arg0: i32, %arg1: i32, %arg2: memref<32x64xbf16, #tpu.memory_space<vmem>>, %arg3: memref<64x128xbf16, #tpu.memory_space<vmem>>, %arg4: memref<32x128xbf16, #tpu.memory_space<vmem>>) attributes {dimension_semantics = [#tpu.dimension_semantics<parallel>, #tpu.dimension_semantics<parallel>], iteration_bounds = array<i64: 1, 1>, scalar_prefetch = 0 : i64, scratch_operands = 0 : i64, tpu.core_type = #tpu.core_type<tc>, window_params = [{transform_indices = @transform_0, window_bounds = array<i64: 32, 64>}, {transform_indices = @transform_1, window_bounds = array<i64: 64, 128>}, {transform_indices = @transform_2, window_bounds = array<i64: 32, 128>}]} {
    %c0 = arith.constant 0 : index
    %c0_0 = arith.constant 0 : index
    %0 = vector.load %arg2[%c0, %c0_0] : memref<32x64xbf16, #tpu.memory_space<vmem>>, vector<32x64xbf16>
    %c0_1 = arith.constant 0 : index
    %c0_2 = arith.constant 0 : index
    %1 = vector.load %arg3[%c0_1, %c0_2] : memref<64x128xbf16, #tpu.memory_space<vmem>>, vector<64x128xbf16>
    %cst = arith.constant dense<0.000000e+00> : vector<32x128xf32>
    %2 = tpu.matmul %0, %1, %cst {dimension_numbers = #tpu.dot_dimension_numbers<[1], [0], [0], [1], [0, 0, 1, 1], [], []>} : vector<32x64xbf16>, vector<64x128xbf16>, vector<32x128xf32> -> vector<32x128xf32>
    %3 = arith.truncf %2 : vector<32x128xf32> to vector<32x128xbf16>
    %c0_3 = arith.constant 0 : index
    %c0_4 = arith.constant 0 : index
    %4 = vector.load %arg4[%c0_3, %c0_4] : memref<32x128xbf16, #tpu.memory_space<vmem>>, vector<32x128xbf16>
    tpu.vector_store %arg4[%c0_3, %c0_4], %3 {strides = array<i32>} : memref<32x128xbf16, #tpu.memory_space<vmem>>, vector<32x128xbf16>,
    return
  }
  func.func @transform_0(%arg0: i32, %arg1: i32) -> (i32, i32) {
    %c0_i32 = arith.constant 0 : i32
    %c0_i32_0 = arith.constant 0 : i32
    return %arg0, %c0_i32 : i32, i32
  }
  func.func @transform_1(%arg0: i32, %arg1: i32) -> (i32, i32) {
    %c0_i32 = arith.constant 0 : i32
    %c0_i32_0 = arith.constant 0 : i32
    return %c0_i32, %arg1 : i32, i32
  }
  func.func @transform_2(%arg0: i32, %arg1: i32) -> (i32, i32) {
    %c0_i32 = arith.constant 0 : i32
    return %arg0, %arg1 : i32, i32
  }
}

</mosaic_0001>

<bundles_post_ra>
// kernel: tpu_custom_call.1
= control target key start
LH: loop header
LB: loop body
LE: loop exit
PB: predicated region body
PF: predicated region fallthrough
CT: control target
= control target key end

     0   :  { %7 = vsyncpa [#allocation3], 0  ;;  %s374_s0 = inlined_call_operand.hbm [shape: bf16[32,64], index: 0, kind: input, shape index: {}]   ;;  %s375_s1 = inlined_call_operand.hbm [shape: bf16[64,128], index: 1, kind: input, shape index: {}]   ;;  %s376_s2 = inlined_call_operand.hbm [shape: bf16[32,128], index: 2, kind: output, shape index: {}]  }
   0x1   :  { %8 = vsyncpa [#allocation6], 0 }
   0x2   :  { %9 = vsyncpa [#allocation4], 0  ;;  %s309_s9 = smov [#allocation2]   ;;  %s237_s13 = scalar_lea.hbm %s374_s0, 256 }
   0x3   :  { %s15_s10 = sshll.u32 %s309_s9, 4  ;;  %p238_p0 = scmp.ne.s32.totalorder %s374_s0, %s237_s13  ;;  %s16_s10 = int_to_ptr.vmem [resolvable:$true] %s15_s10 }
   0x4   :  { %p241_p1 = scmp.lt.u32.totalorder %s237_s13, %s374_s0 }
   0x6   :  { %p243_p2 = pnand %p241_p1, %p238_p0 }
   0x8   :  { %246 = shalt.err (!%p243_p2)
}
   0x9   :  { %s247_s18 = scalar_lea.vmem %s16_s10, 256  ;;  %p252_p4 = scmp.lt.s32.totalorder %s16_s10, %s16_s10 }
   0xa   :  { %p248_p3 = scmp.ne.s32.totalorder %s16_s10, %s247_s18  ;;  %p253_p5 = scmp.lt.s32.totalorder %s247_s18, %s247_s18 }
   0xc   :  { %p254_p6 = por %p253_p5, %p252_p4 }
   0xe   :  { %p255_p7 = pnand %p254_p6, %p248_p3 }
  0x10   :  { %258 = shalt.err (!%p255_p7)
}
  0x11   :  { %s310_s19 = smov 64   ;;  %s311_s20 = smov 4  }
  0x12   :  { %21 = dma.hbm_to_vmem [thread:$0]  %s374_s0, 256, %s16_s10, [#allocation3], %s310_s19, %s310_s19, %s311_s20  }
  0x13   :  { %s312_s23 = smov [#allocation5]   ;;  %s259_s27 = scalar_lea.hbm %s375_s1, 512 }
  0x14   :  { %s27_s24 = sshll.u32 %s312_s23, 4  ;;  %p260_p8 = scmp.ne.s32.totalorder %s375_s1, %s259_s27  ;;  %s28_s24 = int_to_ptr.vmem [resolvable:$true] %s27_s24 }
  0x15   :  { %p263_p9 = scmp.lt.u32.totalorder %s259_s27, %s375_s1 }
  0x17   :  { %p265_p10 = pnand %p263_p9, %p260_p8 }
  0x19   :  { %268 = shalt.err (!%p265_p10)
}
  0x1a   :  { %s269_s4 = scalar_lea.vmem %s28_s24, 512  ;;  %p274_p12 = scmp.lt.s32.totalorder %s28_s24, %s28_s24 }
  0x1b   :  { %p270_p11 = scmp.ne.s32.totalorder %s28_s24, %s269_s4  ;;  %p275_p13 = scmp.lt.s32.totalorder %s269_s4, %s269_s4 }
  0x1d   :  { %p276_p0 = por %p275_p13, %p274_p12 }
  0x1f   :  { %p277_p1 = pnand %p276_p0, %p270_p11 }
  0x21   :  { %280 = shalt.err (!%p277_p1)
}
  0x22   :  { %33 = dma.hbm_to_vmem [thread:$0]  %s375_s1, 512, %s28_s24, [#allocation6], %s310_s19, %s310_s19, %s311_s20  }
  0x23   :  { %303 = dma.done.wait [#allocation3], 256  }
  0x24   :  { %304 = vsyncadd [#allocation3], 4294967040 }
  0x25   :  { %305 = dma.done.wait [#allocation6], 512  }
  0x26   :  { %306 = vsyncadd [#allocation6], 4294966784  ;;  %v231_v0 = vld [vmem:[#allocation5] sm:$0xff]   ;;  %v232_v1 = vld [vmem:[#allocation5 + $0x8] sm:$0xff]   ;;  %vm87_vm0 = vcmask 523264   ;;  %s313_s1 = smov [#allocation7]  }
  0x27   :  { %214 = vmatprep.subr.bf16.mxu0 %v231_v0  ;;  %v233_v2 = vld [vmem:[#allocation5 + $0x10] sm:$0xff]   ;;  %v234_v4 = vld [vmem:[#allocation5 + $0x18] sm:$0xff]   ;;  %s168_s6 = sshll.u32 %s313_s1, 4  ;;  %s169_s6 = int_to_ptr.vmem [resolvable:$true] %s168_s6 }
  0x28   :  { %215 = vmatpush3.bf16.msra.mxu0 %v231_v0  ;;  %v235_v3 = vld [vmem:[#allocation2] sm:$0xff]   ;;  %v236_v5 = vld [vmem:[#allocation2 + $0x8] sm:$0xff]   ;;  %s281_s7 = scalar_lea.vmem %s169_s6, 256  ;;  %p286_p3 = scmp.lt.s32.totalorder %s169_s6, %s169_s6 }
  0x29   :  { %216 = vmatprep.subr.bf16.mxu0 %v232_v1  ;;  %222 = vmatprep.mubr.msk.bf16.mxu0 %vm87_vm0, %v235_v3  ;;  %p282_p2 = scmp.ne.s32.totalorder %s169_s6, %s281_s7  ;;  %p287_p4 = scmp.lt.s32.totalorder %s281_s7, %s281_s7 }
  0x2b   :  { %p288_p5 = por %p287_p4, %p286_p3 }
  0x2c   :  { %217 = vmatpush3.bf16.msra.mxu0 %v232_v1 }
  0x2d   :  { %218 = vmatprep.subr.bf16.mxu0 %v233_v2  ;;  %p289_p6 = pnand %p288_p5, %p282_p2 }
  0x30   :  { %219 = vmatpush3.bf16.msra.mxu0 %v233_v2 }
  0x31   :  { %220 = vmatprep.subr.bf16.mxu0 %v234_v4 }
  0x34   :  { %221 = vmatpush3.bf16.msra.mxu0 %v234_v4 }
  0x37   :  { %223 = vmatmul.mubr.msk.bf16.vlgmr.msra.gmra.mrb[0].mxu0 %vm87_vm0, %v236_v5 }
 0x10a   :  { %v224_v6 = vpop.f32.mrb[0].mxu0 }
 0x10b   :  { %v128_v7 = vpop.f32.mrb[1].mxu0 }
 0x10c   :  { %v225_v8 = vpop.f32.mrb[2].mxu0 }
 0x10d   :  { %v205_v9 = vpack.c.bf16 %v225_v8, %v224_v6  ;;  %v131_v10 = vpop.f32.mrb[3].mxu0 }
 0x10e   :  { %v200_v11 = vpack.c.bf16 %v131_v10, %v128_v7 }
 0x10f   :  { %207 = vst [vmem:[#allocation7 + $0x8] sm:$0xff] %v205_v9  }
 0x110   :  { %201 = vst [vmem:[#allocation7] sm:$0xff] %v200_v11  }
 0x111   :  { %292 = shalt.err (!%p289_p6)
}
 0x112   :  { %s293_s10 = scalar_lea.hbm %s376_s2, 256 }
 0x113   :  { %p294_p7 = scmp.ne.s32.totalorder %s376_s2, %s293_s10  ;;  %p297_p8 = scmp.lt.u32.totalorder %s293_s10, %s376_s2 }
 0x115   :  { %p299_p9 = pnand %p297_p8, %p294_p7 }
 0x117   :  { %302 = shalt.err (!%p299_p9)
}
 0x118   :  { %174 = dma.vmem_to_hbm [thread:$0]  %s169_s6, 256, %s376_s2, [#allocation4], %s310_s19, %s310_s19, %s311_s20  }
 0x119   :  { %307 = dma.done.wait [#allocation4], 256  }
 0x11a   :  { %308 = vsyncadd [#allocation4], 4294967040 }
 0x11b   :  { %178 = vsyncpa [#allocation3], 1 }
 0x11c   :  { %179 = vsyncpa [#allocation6], 1 }
 0x11d   :  { %180 = vsyncpa [#allocation4], 1 }

</bundles_post_ra>
